<compile_context>
chip_gen: v7x
topology: tpu7x:2x2x1
jax: 0.10.0
libtpu: 0.0.40
codegen_flags: <defaults>
</compile_context>

<pallas_src>
import functools

import jax
import jax.numpy as jnp
from jax.experimental import pallas as pl
from jax.experimental.pallas import tpu as pltpu


def _cdiv(a: int, b: int) -> int:
    return -(-a // b)


def _tpu_vmem_and_cores():
    """Returns (per-TensorCore VMEM bytes, has_two_tensorcores) with fallbacks."""
    kind = ""
    try:
        kind = jax.devices()[0].device_kind.lower()
    except Exception:
        pass
    two_tc = ("v7" in kind) or ("7x" in kind)

    vmem = None
    try:
        info = pltpu.get_tpu_info()
        v = getattr(info, "vmem_capacity_bytes", None)
        if v:
            vmem = int(v)
    except Exception:
        vmem = None
    if vmem is None or vmem <= 0:
        if two_tc:
            vmem = 64 << 20
        elif ("v4" in kind) or ("v5" in kind) or ("v6" in kind):
            vmem = 128 << 20
        else:
            vmem = 64 << 20          # conservative default for unknown parts
    if two_tc:
        vmem = min(vmem, 64 << 20)   # v7x: 64 MiB per TensorCore
    return vmem, two_tc


def prepare_se_params(w1, b1, w2, b2):
    """One-time weight prep (hoisted out of the per-call path).

    w1: (Bneck, C) or (Bneck, C, 1)   first 1x1 conv weight
    b1: (Bneck,) or (Bneck, 1)
    w2: (C, Bneck) or (C, Bneck, 1)   second 1x1 conv weight
    b2: (C,) or (C, 1)
    """
    if w1.ndim == 3:
        w1 = w1[..., 0]
    if w2.ndim == 3:
        w2 = w2[..., 0]
    bneck, c = w1.shape
    w1t = jnp.transpose(w1)                                  # (C, Bneck)
    w2t = jnp.transpose(w2)                                  # (Bneck, C)
    b1r = jnp.reshape(b1, (1, bneck)).astype(jnp.float32)    # lane-major row
    b2r = jnp.reshape(b2, (1, c)).astype(jnp.float32)
    return (w1t, b1r, w2t, b2r)


# ---------------------------------------------------------------------------
# Main fused kernel: one (bb, C, T) batch block per grid step.
# ---------------------------------------------------------------------------
def _se_kernel(x_ref, w1t_ref, b1_ref, w2t_ref, b2_ref, o_ref):
    # Pooling read: cast to f32 only inside the mean (no f32 block kept live).
    pooled = jnp.mean(x_ref[...].astype(jnp.float32), axis=-1)          # (bb, C)

    # Conv1d(C -> Bneck, k=1) as a batched GEMM, then ReLU.
    h = jnp.dot(pooled, w1t_ref[...],
                preferred_element_type=jnp.float32) + b1_ref[...]        # (bb, Bneck)
    h = jnp.maximum(h, 0.0)

    # Conv1d(Bneck -> C, k=1) as a batched GEMM, then Sigmoid.
    s = jnp.dot(h, w2t_ref[...],
                preferred_element_type=jnp.float32) + b2_ref[...]        # (bb, C)
    gate = jax.nn.sigmoid(s).astype(o_ref.dtype)                         # (bb, C)

    # Second read of x in its native dtype for the gating store (the multiply
    # stays bf16 for bf16 inputs on v6e/v7x).
    o_ref[...] = x_ref[...] * gate[:, :, None]


# ---------------------------------------------------------------------------
# Fallback kernels: T-chunked two-pass path for oversized per-sample slabs.
# ---------------------------------------------------------------------------
def _se_gate_kernel(x_ref, w1t_ref, b1_ref, w2t_ref, b2_ref, gate_ref, sum_ref,
                    *, total_t, tt):
    t = pl.program_id(1)

    @pl.when(t == 0)
    def _init():
        sum_ref[...] = jnp.zeros_like(sum_ref)

    x = x_ref[...].astype(jnp.float32)                      # (1, C, tt)
    if total_t % tt != 0:
        # Mask the padded tail of the last (partial) T chunk.
        col = jax.lax.broadcasted_iota(jnp.int32, x.shape, 2) + t * tt
        x = jnp.where(col < total_t, x, 0.0)
    sum_ref[...] = sum_ref[...] + jnp.sum(x, axis=-1)       # (1, C)

    @pl.when(t == pl.num_programs(1) - 1)
    def _finish():
        pooled = sum_ref[...] * (1.0 / total_t)              # (1, C)
        h = jnp.dot(pooled, w1t_ref[...],
                    preferred_element_type=jnp.float32) + b1_ref[...]
        h = jnp.maximum(h, 0.0)
        s = jnp.dot(h, w2t_ref[...],
                    preferred_element_type=jnp.float32) + b2_ref[...]
        gate_ref[...] = jax.nn.sigmoid(s)[:, :, None]        # (1, C, 1)


def _se_apply_kernel(x_ref, gate_ref, o_ref):
    o_ref[...] = x_ref[...] * gate_ref[...].astype(o_ref.dtype)


def _se_forward_t_tiled(x, w1t, b1r, w2t, b2r, *, stream_budget, vmem_cap,
                        weight_bytes, donate_x):
    B, C, T = x.shape
    Bneck = w1t.shape[1]
    itemsize = jnp.dtype(x.dtype).itemsize

    # TODO(synk): add channel (C) chunking for the extreme case where even a
    # single (C, 128) column chunk of one sample exceeds the VMEM budget.
    col_bytes = (4 * itemsize + 4) * C
    tt_cap = max(1, stream_budget // col_bytes)
    if T <= 128:
        tt = T
    else:
        tt = min(T, max(128, (tt_cap // 128) * 128))
    grid_t = _cdiv(T, tt)

    # Pass 1: pooled sum over T chunks, gate computed on the last chunk.
    gate_needed = (2 * C * tt * itemsize + C * tt * 4 + 2 * weight_bytes
                   + 8 * C * 4 + (2 << 20))
    gate_vmem = int(min(max(gate_needed, 32 << 20), vmem_cap))
    gate = pl.pallas_call(
        functools.partial(_se_gate_kernel, total_t=T, tt=tt),
        out_shape=jax.ShapeDtypeStruct((B, C, 1), jnp.float32),
        grid_spec=pltpu.PrefetchScalarGridSpec(
            num_scalar_prefetch=0,
            grid=(B, grid_t),
            in_specs=[
                pl.BlockSpec((1, C, tt), lambda b, t: (b, 0, t)),
                pl.BlockSpec((C, Bneck), lambda b, t: (0, 0)),
                pl.BlockSpec((1, Bneck), lambda b, t: (0, 0)),
                pl.BlockSpec((Bneck, C), lambda b, t: (0, 0)),
                pl.BlockSpec((1, C), lambda b, t: (0, 0)),
            ],
            out_specs=pl.BlockSpec((1, C, 1), lambda b, t: (b, 0, 0)),
            scratch_shapes=[pltpu.VMEM((1, C), jnp.float32)],
        ),
        compiler_params=pltpu.CompilerParams(
            dimension_semantics=("parallel", "arbitrary"),
            vmem_limit_bytes=gate_vmem),
    )(x, w1t, b1r, w2t, b2r)

    # Pass 2: re-stream T chunks and apply the gate.
    apply_needed = 4 * C * tt * itemsize + 8 * C * 4 + (2 << 20)
    apply_vmem = int(min(max(apply_needed, 32 << 20), vmem_cap))
    return pl.pallas_call(
        _se_apply_kernel,
        out_shape=jax.ShapeDtypeStruct((B, C, T), x.dtype),
        grid_spec=pltpu.PrefetchScalarGridSpec(
            num_scalar_prefetch=0,
            grid=(B, grid_t),
            in_specs=[
                pl.BlockSpec((1, C, tt), lambda b, t: (b, 0, t)),
                pl.BlockSpec((1, C, 1), lambda b, t: (b, 0, 0)),
            ],
            out_specs=pl.BlockSpec((1, C, tt), lambda b, t: (b, 0, t)),
        ),
        compiler_params=pltpu.CompilerParams(
            dimension_semantics=("parallel", "parallel"),
            vmem_limit_bytes=apply_vmem),
        input_output_aliases=({0: 0} if donate_x else {}),
    )(x, gate)


# ---------------------------------------------------------------------------
# Public forward.
# ---------------------------------------------------------------------------
def se_module_forward(x, params, *, donate_x=False, max_stream_bytes=None):
    """Fused SE forward.  x: (B, C, T); params from prepare_se_params()."""
    w1t, b1r, w2t, b2r = params
    B, C, T = x.shape
    Cw, Bneck = w1t.shape
    assert Cw == C, (Cw, C)
    itemsize = jnp.dtype(x.dtype).itemsize
    w_itemsize = jnp.dtype(w1t.dtype).itemsize

    phys_vmem, two_tc = _tpu_vmem_and_cores()
    vmem_cap = phys_vmem - (8 << 20)                 # headroom below physical
    weight_bytes = ((w1t.size + w2t.size) * w_itemsize
                    + (b1r.size + b2r.size) * 4)

    if max_stream_bytes is None:
        stream_budget = min(int(0.80 * vmem_cap),
                            vmem_cap - 2 * weight_bytes - (4 << 20))
        stream_budget = max(stream_budget, 4 << 20)
    else:
        stream_budget = int(max_stream_bytes)        # test/override hook

    # Per-sample cost of one grid step: 2 in + 2 out double-buffered blocks in
    # the native dtype, plus one transient f32 block for the pooling cast.
    per_sample = (4 * itemsize + 4) * C * T

    if per_sample > stream_budget:
        # A single sample's (C, T) slab does not fit -> two-pass T tiling.
        return _se_forward_t_tiled(x, w1t, b1r, w2t, b2r,
                                   stream_budget=stream_budget,
                                   vmem_cap=vmem_cap,
                                   weight_bytes=weight_bytes,
                                   donate_x=donate_x)

    cap = max(1, stream_budget // per_sample)
    bb = min(cap, B)
    if two_tc and B >= 2:
        # Keep >= 2 grid steps (and an even count) so both TensorCores get
        # balanced work on v7x; single-TC chips keep the full-size blocks.
        bb = min(bb, _cdiv(B, 2))
        while bb > 1 and _cdiv(B, bb) % 2 == 1:
            bb -= 1
    grid_b = _cdiv(B, bb)        # partial (masked) last batch block is fine

    blk = bb * C * T * itemsize
    vmem_needed = 4 * blk + bb * C * T * 4 + 2 * weight_bytes + (2 << 20)
    vmem_limit = int(min(max(vmem_needed, 32 << 20), vmem_cap))

    return pl.pallas_call(
        _se_kernel,
        out_shape=jax.ShapeDtypeStruct((B, C, T), x.dtype),
        grid_spec=pltpu.PrefetchScalarGridSpec(
            num_scalar_prefetch=0,
            grid=(grid_b,),
            in_specs=[
                pl.BlockSpec((bb, C, T), lambda b: (b, 0, 0)),
                pl.BlockSpec((C, Bneck), lambda b: (0, 0)),
                pl.BlockSpec((1, Bneck), lambda b: (0, 0)),
                pl.BlockSpec((Bneck, C), lambda b: (0, 0)),
                pl.BlockSpec((1, C), lambda b: (0, 0)),
            ],
            out_specs=pl.BlockSpec((bb, C, T), lambda b: (b, 0, 0)),
        ),
        compiler_params=pltpu.CompilerParams(
            dimension_semantics=("parallel",),
            vmem_limit_bytes=vmem_limit),
        input_output_aliases=({0: 0} if donate_x else {}),
    )(x, w1t, b1r, w2t, b2r)


def se_module_reference(x, w1, b1, w2, b2):
    if w1.ndim == 3:
        w1 = w1[..., 0]
    if w2.ndim == 3:
        w2 = w2[..., 0]
    pooled = jnp.mean(x, axis=-1)                                # (B, C)
    h = jnp.maximum(pooled @ w1.T + b1.reshape(1, -1), 0.0)      # (B, Bneck)
    s = h @ w2.T + b2.reshape(1, -1)                             # (B, C)
    return x * jax.nn.sigmoid(s)[:, :, None]


if __name__ == "__main__":
    def _run_case(B, C, T, Bneck, max_stream_bytes=None, seed=0, tol=1e-5):
        key = jax.random.PRNGKey(seed)
        kx, k1, k2, k3, k4 = jax.random.split(key, 5)
        x = jax.random.normal(kx, (B, C, T), dtype=jnp.float32)
        w1 = jax.random.normal(k1, (Bneck, C), dtype=jnp.float32) * 0.1
        b1 = jax.random.normal(k2, (Bneck,), dtype=jnp.float32) * 0.1
        w2 = jax.random.normal(k3, (C, Bneck), dtype=jnp.float32) * 0.1
        b2 = jax.random.normal(k4, (C,), dtype=jnp.float32) * 0.1

        params = prepare_se_params(w1, b1, w2, b2)   # hoisted weight prep
        out = jax.block_until_ready(
            se_module_forward(x, params, max_stream_bytes=max_stream_bytes))
        ref = se_module_reference(x, w1, b1, w2, b2)
        assert out.shape == (B, C, T)
        err = float(jnp.max(jnp.abs(out - ref)))
        assert jnp.allclose(out, ref, atol=tol, rtol=tol), err

    # Primary small case (lane-dense T, C a multiple of the sublane tile).
    _run_case(B=2, C=8, T=256, Bneck=128)
    # cdiv batch grid with a partial (masked) last block, forced small budget.
    _run_case(B=3, C=8, T=128, Bneck=128, max_stream_bytes=41 * 1024)
    # C not a multiple of 8 (full-extent trailing dims keep the blocks legal).
    _run_case(B=3, C=5, T=128, Bneck=64)
    # Oversized-sample fallback: two-pass T-chunked path (T % chunk == 0).
    _run_case(B=2, C=8, T=384, Bneck=128, max_stream_bytes=20 * 1024)
    # Fallback with a partial (masked) trailing T chunk.
    _run_case(B=2, C=8, T=200, Bneck=128, max_stream_bytes=20 * 1024)

    print("KERNEL_OK")
</pallas_src>

<mosaic_0001>
module attributes {stable_mosaic.version = 11 : i64} {
  func.func @_se_kernel(%arg0: i32, %arg1: memref<2x8x256xf32, #tpu.memory_space<vmem>>, %arg2: memref<8x128xf32, #tpu.memory_space<vmem>>, %arg3: memref<1x128xf32, #tpu.memory_space<vmem>>, %arg4: memref<128x8xf32, #tpu.memory_space<vmem>>, %arg5: memref<1x8xf32, #tpu.memory_space<vmem>>, %arg6: memref<2x8x256xf32, #tpu.memory_space<vmem>>) attributes {dimension_semantics = [#tpu.dimension_semantics<parallel>], iteration_bounds = array<i64: 1>, scalar_prefetch = 0 : i64, scratch_operands = 0 : i64, tpu.core_type = #tpu.core_type<tc>, window_params = [{transform_indices = @transform_0, window_bounds = array<i64: 2, 8, 256>}, {pipeline_mode = #tpu.pipeline_mode<synchronous>, transform_indices = @transform_1, window_bounds = array<i64: 8, 128>}, {pipeline_mode = #tpu.pipeline_mode<synchronous>, transform_indices = @transform_2, window_bounds = array<i64: 1, 128>}, {pipeline_mode = #tpu.pipeline_mode<synchronous>, transform_indices = @transform_3, window_bounds = array<i64: 128, 8>}, {pipeline_mode = #tpu.pipeline_mode<synchronous>, transform_indices = @transform_4, window_bounds = array<i64: 1, 8>}, {transform_indices = @transform_5, window_bounds = array<i64: 2, 8, 256>}]} {
    %c0 = arith.constant 0 : index
    %c0_0 = arith.constant 0 : index
    %c0_1 = arith.constant 0 : index
    %0 = vector.load %arg1[%c0, %c0_0, %c0_1] : memref<2x8x256xf32, #tpu.memory_space<vmem>>, vector<2x8x256xf32>
    %cst = arith.constant dense<0.000000e+00> : vector<2x8xf32>
    %1 = vector.multi_reduction <add>, %0, %cst [2] : vector<2x8x256xf32> to vector<2x8xf32>
    %cst_2 = arith.constant 2.560000e+02 : f32
    %2 = vector.broadcast %cst_2 : f32 to vector<2x8xf32>
    %3 = arith.divf %1, %2 : vector<2x8xf32>
    %c0_3 = arith.constant 0 : index
    %c0_4 = arith.constant 0 : index
    %4 = vector.load %arg2[%c0_3, %c0_4] : memref<8x128xf32, #tpu.memory_space<vmem>>, vector<8x128xf32>
    %cst_5 = arith.constant dense<0.000000e+00> : vector<2x128xf32>
    %5 = tpu.matmul %3, %4, %cst_5 {dimension_numbers = #tpu.dot_dimension_numbers<[1], [0], [0], [1], [0, 0, 1, 1], [], []>} : vector<2x8xf32>, vector<8x128xf32>, vector<2x128xf32> -> vector<2x128xf32>
    %c0_6 = arith.constant 0 : index
    %c0_7 = arith.constant 0 : index
    %6 = vector.load %arg3[%c0_6, %c0_7] : memref<1x128xf32, #tpu.memory_space<vmem>>, vector<1x128xf32>
    %7 = vector.broadcast %6 : vector<1x128xf32> to vector<2x128xf32>
    %8 = arith.addf %5, %7 : vector<2x128xf32>
    %cst_8 = arith.constant 0.000000e+00 : f32
    %9 = vector.broadcast %cst_8 : f32 to vector<2x128xf32>
    %10 = arith.maximumf %8, %9 : vector<2x128xf32>
    %c0_9 = arith.constant 0 : index
    %c0_10 = arith.constant 0 : index
    %11 = vector.load %arg4[%c0_9, %c0_10] : memref<128x8xf32, #tpu.memory_space<vmem>>, vector<128x8xf32>
    %cst_11 = arith.constant dense<0.000000e+00> : vector<2x8xf32>
    %12 = tpu.matmul %10, %11, %cst_11 {dimension_numbers = #tpu.dot_dimension_numbers<[1], [0], [0], [1], [0, 0, 1, 1], [], []>} : vector<2x128xf32>, vector<128x8xf32>, vector<2x8xf32> -> vector<2x8xf32>
    %c0_12 = arith.constant 0 : index
    %c0_13 = arith.constant 0 : index
    %13 = vector.load %arg5[%c0_12, %c0_13] : memref<1x8xf32, #tpu.memory_space<vmem>>, vector<1x8xf32>
    %14 = vector.broadcast %13 : vector<1x8xf32> to vector<2x8xf32>
    %15 = arith.addf %12, %14 : vector<2x8xf32>
    %16 = arith.negf %15 : vector<2x8xf32>
    %17 = math.exp %16 : vector<2x8xf32>
    %cst_14 = arith.constant 1.000000e+00 : f32
    %18 = vector.broadcast %cst_14 : f32 to vector<2x8xf32>
    %19 = arith.addf %18, %17 : vector<2x8xf32>
    %20 = arith.divf %18, %19 : vector<2x8xf32>
    %c0_15 = arith.constant 0 : index
    %c0_16 = arith.constant 0 : index
    %c0_17 = arith.constant 0 : index
    %21 = vector.load %arg1[%c0_15, %c0_16, %c0_17] : memref<2x8x256xf32, #tpu.memory_space<vmem>>, vector<2x8x256xf32>
    %22 = vector.shape_cast %20 : vector<2x8xf32> to vector<2x8x1xf32>
    %23 = vector.broadcast %22 : vector<2x8x1xf32> to vector<2x8x256xf32>
    %24 = arith.mulf %21, %23 : vector<2x8x256xf32>
    %c0_18 = arith.constant 0 : index
    %c0_19 = arith.constant 0 : index
    %c0_20 = arith.constant 0 : index
    %25 = vector.load %arg6[%c0_18, %c0_19, %c0_20] : memref<2x8x256xf32, #tpu.memory_space<vmem>>, vector<2x8x256xf32>
    tpu.vector_store %arg6[%c0_18, %c0_19, %c0_20], %24 {strides = array<i32>} : memref<2x8x256xf32, #tpu.memory_space<vmem>>, vector<2x8x256xf32>,
    return
  }
  func.func @transform_0(%arg0: i32) -> (i32, i32, i32) {
    %c0_i32 = arith.constant 0 : i32
    %c0_i32_0 = arith.constant 0 : i32
    %c0_i32_1 = arith.constant 0 : i32
    return %arg0, %c0_i32, %c0_i32_0 : i32, i32, i32
  }
  func.func @transform_1(%arg0: i32) -> (i32, i32) {
    %c0_i32 = arith.constant 0 : i32
    %c0_i32_0 = arith.constant 0 : i32
    %c0_i32_1 = arith.constant 0 : i32
    return %c0_i32, %c0_i32_0 : i32, i32
  }
  func.func @transform_2(%arg0: i32) -> (i32, i32) {
    %c0_i32 = arith.constant 0 : i32
    %c0_i32_0 = arith.constant 0 : i32
    %c0_i32_1 = arith.constant 0 : i32
    return %c0_i32, %c0_i32_0 : i32, i32
  }
  func.func @transform_3(%arg0: i32) -> (i32, i32) {
    %c0_i32 = arith.constant 0 : i32
    %c0_i32_0 = arith.constant 0 : i32
    %c0_i32_1 = arith.constant 0 : i32
    return %c0_i32, %c0_i32_0 : i32, i32
  }
  func.func @transform_4(%arg0: i32) -> (i32, i32) {
    %c0_i32 = arith.constant 0 : i32
    %c0_i32_0 = arith.constant 0 : i32
    %c0_i32_1 = arith.constant 0 : i32
    return %c0_i32, %c0_i32_0 : i32, i32
  }
  func.func @transform_5(%arg0: i32) -> (i32, i32, i32) {
    %c0_i32 = arith.constant 0 : i32
    %c0_i32_0 = arith.constant 0 : i32
    %c0_i32_1 = arith.constant 0 : i32
    return %arg0, %c0_i32, %c0_i32_0 : i32, i32, i32
  }
}

</mosaic_0001>

<bundles_post_ra>
// kernel: tpu_custom_call.1
= control target key start
LH: loop header
LB: loop body
LE: loop exit
PB: predicated region body
PF: predicated region fallthrough
CT: control target
= control target key end

     0   :  { %s521_s0 = inlined_call_operand.vmem [shape: f32[2,8,256], index: 0, kind: input, shape index: {}]   ;;  %s522_s1 = inlined_call_operand.vmem [shape: f32[8,128], index: 1, kind: input, shape index: {}]   ;;  %s523_s2 = inlined_call_operand.vmem [shape: f32[1,128], index: 2, kind: input, shape index: {}]   ;;  %s524_s3 = inlined_call_operand.vmem [shape: f32[128,8], index: 3, kind: input, shape index: {}]   ;;  %s525_s4 = inlined_call_operand.vmem [shape: f32[1,8], index: 4, kind: input, shape index: {}]   ;;  %s526_s5 = inlined_call_operand.hbm [shape: f32[2,8,256], index: 5, kind: output, shape index: {}]  }
   0x1   :  { %v427_v0 = vld [vmem:[%s521_s0] sm:$0xff]  ;;  %v432_v1 = vld [vmem:[%s521_s0 + $0x8] sm:$0xff]  ;;  %v437_v2 = vld [vmem:[%s521_s0 + $0x10] sm:$0xff] }
   0x2   :  { %v25_v3 = vadd.f32 %v432_v1, %v427_v0  ;;  %v444_v4 = vld [vmem:[%s521_s0 + $0x18] sm:$0xff] }
   0x3   :  { %10 = vsyncpa [#allocation3], 0  ;;  %v28_v5 = vadd.f32 %v444_v4, %v437_v2  ;;  %v34_v6 = vld [vmem:[%s522_s1] sm:$0xff]  ;;  %v388_v7 = vmov 0.0   ;;  %vm389_vm0 = vmmov 0   ;;  %v131_v9 = vld [vmem:[%s524_s3 + $0x8] sm:$0xff]  ;;  %v44_v30 = vlaneseq }
   0x4   :  { %26 = vadd.xlane.f32.xlu0 %v25_v3  ;;  %290 = vmatprep.subr.mxu0 %v388_v7  ;;  %v130_v8 = vld [vmem:[%s524_s3] sm:$0xff]  ;;  %v132_v10 = vld [vmem:[%s524_s3 + $0x10] sm:$0xff]  ;;  %v390_v11 = vmov 0.0|0.0   ;;  %v133_v13 = vld [vmem:[%s524_s3 + $0x18] sm:$0xff]  ;;  %vm54_vm1 = vcmask 1041409   ;;  %vm56_vm2 = vcmask 64512  }
   0x5   :  { %292 = vmatprep.mubr.msk.f32.mxu0 %vm389_vm0, %v388_v7  ;;  %291 = vmatpush3.msra.mxu0 %v34_v6  ;;  %v331_v12 = vpack.c.bf16 %v131_v9, %v130_v8  ;;  %v334_v14 = vpack.c.bf16 %v133_v13, %v132_v10  ;;  %v134_v15 = vld [vmem:[%s524_s3 + $0x20] sm:$0xff]  ;;  %v135_v16 = vld [vmem:[%s524_s3 + $0x28] sm:$0xff]  ;;  %v136_v18 = vld [vmem:[%s524_s3 + $0x30] sm:$0xff]  ;;  %v45_v31 = vand.u32 127, %v44_v30  ;;  %v47_v32 = vshrl.u32 %v44_v30, 7 }
   0x6   :  { %327 = vmatprep.mubr.msk.f32.mxu1 %vm389_vm0, %v388_v7  ;;  %330 = vmatprep.subr.bf16.mxu1 %v390_v11  ;;  %v337_v17 = vpack.c.bf16 %v135_v16, %v134_v15  ;;  %v137_v19 = vld [vmem:[%s524_s3 + $0x38] sm:$0xff]  ;;  %v138_v21 = vld [vmem:[%s524_s3 + $0x40] sm:$0xff]  ;;  %v139_v22 = vld [vmem:[%s524_s3 + $0x48] sm:$0xff] }
   0x7   :  { %332 = vmatpush3.bf16.msra.mxu1 %v331_v12  ;;  %v340_v20 = vpack.c.bf16 %v137_v19, %v136_v18  ;;  %v343_v23 = vpack.c.bf16 %v139_v22, %v138_v21  ;;  %v140_v24 = vld [vmem:[%s524_s3 + $0x50] sm:$0xff]  ;;  %v141_v25 = vld [vmem:[%s524_s3 + $0x58] sm:$0xff]  ;;  %v142_v27 = vld [vmem:[%s524_s3 + $0x60] sm:$0xff]  ;;  %v48_v34 = vsub.s32 %v45_v31, %v47_v32  ;;  %v231_v56 = vsub.s32 0, %v47_v32 }
   0x8   :  { %29 = vadd.xlane.f32.xlu0 %v28_v5  ;;  %333 = vmatprep.subr.bf16.mxu1 %v390_v11  ;;  %v346_v26 = vpack.c.bf16 %v141_v25, %v140_v24  ;;  %v143_v28 = vld [vmem:[%s524_s3 + $0x68] sm:$0xff]  ;;  %v144_v41 = vld [vmem:[%s524_s3 + $0x70] sm:$0xff]  ;;  %v145_v42 = vld [vmem:[%s524_s3 + $0x78] sm:$0xff]  ;;  %v238_v59 = vsub.s32 1, %v47_v32 }
   0x9   :  { %v349_v29 = vpack.c.bf16 %v143_v28, %v142_v27  ;;  %v352_v43 = vpack.c.bf16 %v145_v42, %v144_v41  ;;  %v267_v44 = vld [vmem:[%s523_s2] ss:$0 sm:$0xff]  ;;  %s391_s2 = smov [#allocation2]  }
   0xa   :  { %v269_v49 = vld [vmem:[%s525_s4] ss:$0 sm:$0xff]  ;;  %s256_s3 = sshll.u32 %s391_s2, 4  ;;  %s257_s3 = int_to_ptr.vmem [resolvable:$true] %s256_s3 }
   0xb   :  { %335 = vmatpush3.bf16.msra.mxu1 %v334_v14  ;;  %s364_s4 = scalar_lea.vmem %s257_s3, 512  ;;  %p369_p1 = scmp.lt.s32.totalorder %s257_s3, %s257_s3 }
   0xc   :  { %336 = vmatprep.subr.bf16.mxu1 %v390_v11  ;;  %p365_p0 = scmp.ne.s32.totalorder %s257_s3, %s364_s4  ;;  %p370_p2 = scmp.lt.s32.totalorder %s364_s4, %s364_s4 }
   0xe   :  { %p371_p3 = por %p370_p2, %p369_p1 }
   0xf   :  { %338 = vmatpush3.bf16.msra.mxu1 %v337_v17 }
  0x10   :  { %339 = vmatprep.subr.bf16.mxu1 %v390_v11  ;;  %p372_p4 = pnand %p371_p3, %p365_p0 }
  0x13   :  { %341 = vmatpush3.bf16.msra.mxu1 %v340_v20 }
  0x14   :  { %342 = vmatprep.subr.bf16.mxu1 %v390_v11 }
  0x17   :  { %344 = vmatpush3.bf16.msra.mxu1 %v343_v23 }
  0x18   :  { %345 = vmatprep.subr.bf16.mxu1 %v390_v11 }
  0x1b   :  { %347 = vmatpush3.bf16.msra.mxu1 %v346_v26 }
  0x1c   :  { %348 = vmatprep.subr.bf16.mxu1 %v390_v11 }
  0x1f   :  { %350 = vmatpush3.bf16.msra.mxu1 %v349_v29 }
  0x20   :  { %351 = vmatprep.subr.bf16.mxu1 %v390_v11 }
  0x23   :  { %353 = vmatpush3.bf16.msra.mxu1 %v352_v43 }
  0x91   :  { %v27_v33 = vpop.xlane.xlu0 %26 }
  0x92   :  { %v32_v35 = vmul.f32 0.00390625, %v27_v33 }
  0x94   :  { %v49_v38 = vrot.slane %v32_v35, %v48_v34 }
  0x95   :  { %v30_v36 = vpop.xlane.xlu0 %29 }
  0x96   :  { %v33_v37 = vmul.f32 0.00390625, %v30_v36 }
  0x98   :  { %v53_v39 = vrot.slane %v33_v37, %v48_v34 }
  0x9a   :  { %v55_v40 = vsel %vm54_vm1, %v53_v39, %v49_v38 }
  0x9b   :  { %293 = vmatmul.mubr.msk.f32.vlgmr.msra.gmra.mrb[0].mxu0 %vm56_vm2, %v55_v40 }
 0x16e   :  { %v125_v45 = vpop.f32.mrb[0].mxu0 }
 0x16f   :  { %v126_v46 = vadd.f32 %v267_v44, %v125_v45  ;;  %v294_v47 = vpop.f32.mrb[1].mxu0 }
 0x171   :  { %v129_v48 = vmax.f32 %v126_v46, 0.0 }
 0x173   :  { %328 = vmatmul.mubr.f32.vlgmr.msra.gmra.mrb[0].mxu1 %v129_v48 }
 0x246   :  { %v219_v50 = vpop.f32.mrb[0].mxu1 }
 0x247   :  { %v220_v51 = vadd.f32 %v269_v49, %v219_v50  ;;  %v329_v52 = vpop.f32.mrb[1].mxu1 }
 0x249   :  { %v270_v53 = vmul.f32 -1.442695, %v220_v51 }
 0x24b   :  { %360 = vpow2.f32 %v270_v53 }
 0x255   :  { %v361_v54 = vpop.eup %360 }
 0x256   :  { %v226_v55 = vadd.f32 1.0, %v361_v54 }
 0x258   :  { %362 = vrcp.f32 %v226_v55 }
 0x262   :  { %v363_v57 = vpop.eup %362 }
 0x263   :  { %v232_v58 = vrot.slane %v363_v57, %v231_v56  ;;  %v239_v60 = vrot.slane %v363_v57, %v238_v59 }
 0x265   :  { %234 = vbcast.lane.b32.xlu1 %v232_v58, 256 }
 0x269   :  { %241 = vbcast.lane.b32.xlu1 %v239_v60, 256 }
 0x2d7   :  { %v235_v61 = vpop.permute.xlu1 %234 }
 0x2d8   :  { %v243_v62 = vmul.f32 %v235_v61, %v427_v0  ;;  %v244_v63 = vmul.f32 %v235_v61, %v432_v1 }
 0x2da   :  { %247 = vst [vmem:[#allocation2] sm:$0xff] %v243_v62  ;;  %248 = vst [vmem:[#allocation2 + $0x8] sm:$0xff] %v244_v63 }
 0x2db   :  { %v242_v3 = vpop.permute.xlu1 %241 }
 0x2dc   :  { %v245_v5 = vmul.f32 %v242_v3, %v437_v2  ;;  %v246_v6 = vmul.f32 %v242_v3, %v444_v4 }
 0x2de   :  { %249 = vst [vmem:[#allocation2 + $0x10] sm:$0xff] %v245_v5  ;;  %250 = vst [vmem:[#allocation2 + $0x18] sm:$0xff] %v246_v6 }
 0x2df   :  { %375 = shalt.err (!%p372_p4)
}
 0x2e0   :  { %s376_s12 = scalar_lea.hbm %s526_s5, 512 }
 0x2e1   :  { %p377_p5 = scmp.ne.s32.totalorder %s526_s5, %s376_s12  ;;  %p380_p6 = scmp.lt.u32.totalorder %s376_s12, %s526_s5 }
 0x2e3   :  { %p382_p7 = pnand %p380_p6, %p377_p5 }
 0x2e5   :  { %385 = shalt.err (!%p382_p7)
}
 0x2e6   :  { %s392_s17 = smov 256   ;;  %s393_s18 = smov 16  }
 0x2e7   :  { %262 = dma.vmem_to_hbm [thread:$0]  %s257_s3, 512, %s526_s5, [#allocation3], %s392_s17, %s392_s17, %s393_s18  }
 0x2e8   :  { %386 = dma.done.wait [#allocation3], 512  }
 0x2e9   :  { %387 = vsyncadd [#allocation3], 4294966784 }
 0x2ea   :  { %266 = vsyncpa [#allocation3], 1 }

</bundles_post_ra>
